<compile_context>
chip_gen: v5e
topology: v5e:2x2
jax: 0.10.0
libtpu: 0.0.40
codegen_flags: <defaults>
</compile_context>

<pallas_src>
import functools
import math

import jax
import jax.numpy as jnp
from jax.experimental import pallas as pl
from jax.experimental.pallas import tpu as pltpu


_LANE = 128      # f32 lane tiling unit (last dim)
_SUBLANE = 8     # f32 sublane tiling unit (second-to-last dim)
_MAX_TB = 256    # batch-tile cap; keeps double-buffered tiles well inside v7x scoped VMEM


def _round_up(x, m):
    return ((x + m - 1) // m) * m


def _se_predictor_kernel(e1_ref, e2_ref, w_ref, b_ref, o_ref, *, in_feats):
    # cat([e1, e2], axis=1) @ W == e1 @ W[:F] + e2 @ W[F:]  (exact, f32 accumulation)
    acc = jnp.dot(e1_ref[...], w_ref[:in_feats, :],
                  preferred_element_type=jnp.float32)
    acc += jnp.dot(e2_ref[...], w_ref[in_feats:, :],
                   preferred_element_type=jnp.float32)
    o_ref[...] = (acc + b_ref[...]).astype(o_ref.dtype)


@jax.jit
def side_effect_predictor_forward(drug_embedding1, drug_embedding2, weight, bias):
    """weight: (2*in_feats, h_feats) (i.e. PyTorch lin1.weight.T), bias: (h_feats,)."""
    B, F = drug_embedding1.shape
    two_f, H = weight.shape
    assert two_f == 2 * F

    # Lane-dense output: pad H to a multiple of 128 (zero columns, sliced off at the end).
    Hp = _round_up(H, _LANE)
    # Batch tiling: largest sublane-aligned tile up to _MAX_TB; pad B to a multiple of it.
    TB = min(_MAX_TB, _round_up(B, _SUBLANE))
    Bp = _round_up(B, TB)

    e1 = jnp.pad(drug_embedding1, ((0, Bp - B), (0, 0)))
    e2 = jnp.pad(drug_embedding2, ((0, Bp - B), (0, 0)))
    w = jnp.pad(weight, ((0, 0), (0, Hp - H)))
    b = jnp.pad(bias.reshape(1, H), ((0, 0), (0, Hp - H)))

    kernel = functools.partial(_se_predictor_kernel, in_feats=F)

    cost = pl.CostEstimate(
        flops=2 * Bp * (2 * F) * Hp,
        transcendentals=0,
        bytes_accessed=4 * (2 * Bp * F + 2 * F * Hp + Bp * Hp + Hp),
    )

    out_p = pl.pallas_call(
        kernel,
        out_shape=jax.ShapeDtypeStruct((Bp, Hp), drug_embedding1.dtype),
        grid_spec=pltpu.PrefetchScalarGridSpec(
            num_scalar_prefetch=0,
            grid=(Bp // TB,),
            in_specs=[
                pl.BlockSpec((TB, F), lambda i: (i, 0)),        # e1 tile
                pl.BlockSpec((TB, F), lambda i: (i, 0)),        # e2 tile
                pl.BlockSpec((2 * F, Hp), lambda i: (0, 0)),    # full weight, resident
                pl.BlockSpec((1, Hp), lambda i: (0, 0)),        # bias, resident
            ],
            out_specs=pl.BlockSpec((TB, Hp), lambda i: (i, 0)),
        ),
        compiler_params=pltpu.CompilerParams(
            dimension_semantics=("parallel",),
        ),
        cost_estimate=cost,
    )(e1, e2, w, b)

    return out_p[:B, :H]


def init_params(key, in_feats, h_feats, dtype=jnp.float32):
    """Deterministic init matching torch.nn.Linear(in_feats*2, h_feats) shapes.

    PyTorch uses U(-1/sqrt(fan_in), 1/sqrt(fan_in)); reproduced with JAX PRNG.
    Weight is stored pre-transposed: (2*in_feats, h_feats).
    """
    fan_in = in_feats * 2
    bound = 1.0 / math.sqrt(fan_in)
    k_w, k_b = jax.random.split(key)
    weight = jax.random.uniform(k_w, (fan_in, h_feats), dtype, -bound, bound)
    bias = jax.random.uniform(k_b, (h_feats,), dtype, -bound, bound)
    return weight, bias


if __name__ == "__main__":
    key = jax.random.PRNGKey(0)
    k1, k2, k_params = jax.random.split(key, 3)

    batch = 2
    in_feats = 16
    h_feats = 32

    drug_embedding1 = jax.random.normal(k1, (batch, in_feats), jnp.float32)
    drug_embedding2 = jax.random.normal(k2, (batch, in_feats), jnp.float32)
    weight, bias = init_params(k_params, in_feats, h_feats)

    out = side_effect_predictor_forward(drug_embedding1, drug_embedding2, weight, bias)
    out = jax.block_until_ready(out)

    # Reference: plain JAX, same math as the PyTorch module (dropout_rate=0 -> identity).
    ref = jnp.concatenate([drug_embedding1, drug_embedding2], axis=1) @ weight + bias
    assert out.shape == (batch, h_feats)
    assert jnp.allclose(out, ref, atol=1e-5, rtol=1e-5)

    print("KERNEL_OK")
</pallas_src>

<mosaic_0001>
module attributes {stable_mosaic.version = 11 : i64} {
  func.func @_se_predictor_kernel(%arg0: i32, %arg1: memref<8x16xf32, #tpu.memory_space<vmem>>, %arg2: memref<8x16xf32, #tpu.memory_space<vmem>>, %arg3: memref<32x128xf32, #tpu.memory_space<vmem>>, %arg4: memref<1x128xf32, #tpu.memory_space<vmem>>, %arg5: memref<8x128xf32, #tpu.memory_space<vmem>>) attributes {dimension_semantics = [#tpu.dimension_semantics<parallel>], iteration_bounds = array<i64: 1>, scalar_prefetch = 0 : i64, scratch_operands = 0 : i64, tpu.core_type = #tpu.core_type<tc>, window_params = [{transform_indices = @transform_0, window_bounds = array<i64: 8, 16>}, {transform_indices = @transform_1, window_bounds = array<i64: 8, 16>}, {pipeline_mode = #tpu.pipeline_mode<synchronous>, transform_indices = @transform_2, window_bounds = array<i64: 32, 128>}, {pipeline_mode = #tpu.pipeline_mode<synchronous>, transform_indices = @transform_3, window_bounds = array<i64: 1, 128>}, {transform_indices = @transform_4, window_bounds = array<i64: 8, 128>}]} {
    %c0 = arith.constant 0 : index
    %c0_0 = arith.constant 0 : index
    %0 = vector.load %arg1[%c0, %c0_0] : memref<8x16xf32, #tpu.memory_space<vmem>>, vector<8x16xf32>
    %c0_1 = arith.constant 0 : index
    %c0_2 = arith.constant 0 : index
    %1 = vector.load %arg3[%c0_1, %c0_2] : memref<32x128xf32, #tpu.memory_space<vmem>>, vector<16x128xf32>
    %cst = arith.constant dense<0.000000e+00> : vector<8x128xf32>
    %2 = tpu.matmul %0, %1, %cst {dimension_numbers = #tpu.dot_dimension_numbers<[1], [0], [0], [1], [0, 0, 1, 1], [], []>} : vector<8x16xf32>, vector<16x128xf32>, vector<8x128xf32> -> vector<8x128xf32>
    %c0_3 = arith.constant 0 : index
    %c0_4 = arith.constant 0 : index
    %3 = vector.load %arg2[%c0_3, %c0_4] : memref<8x16xf32, #tpu.memory_space<vmem>>, vector<8x16xf32>
    %c16 = arith.constant 16 : index
    %c0_5 = arith.constant 0 : index
    %4 = vector.load %arg3[%c16, %c0_5] : memref<32x128xf32, #tpu.memory_space<vmem>>, vector<16x128xf32>
    %cst_6 = arith.constant dense<0.000000e+00> : vector<8x128xf32>
    %5 = tpu.matmul %3, %4, %cst_6 {dimension_numbers = #tpu.dot_dimension_numbers<[1], [0], [0], [1], [0, 0, 1, 1], [], []>} : vector<8x16xf32>, vector<16x128xf32>, vector<8x128xf32> -> vector<8x128xf32>
    %6 = arith.addf %2, %5 : vector<8x128xf32>
    %c0_7 = arith.constant 0 : index
    %c0_8 = arith.constant 0 : index
    %7 = vector.load %arg4[%c0_7, %c0_8] : memref<1x128xf32, #tpu.memory_space<vmem>>, vector<1x128xf32>
    %8 = vector.broadcast %7 : vector<1x128xf32> to vector<8x128xf32>
    %9 = arith.addf %6, %8 : vector<8x128xf32>
    %c0_9 = arith.constant 0 : index
    %c0_10 = arith.constant 0 : index
    %10 = vector.load %arg5[%c0_9, %c0_10] : memref<8x128xf32, #tpu.memory_space<vmem>>, vector<8x128xf32>
    tpu.vector_store %arg5[%c0_9, %c0_10], %9 {strides = array<i32>} : memref<8x128xf32, #tpu.memory_space<vmem>>, vector<8x128xf32>,
    return
  }
  func.func @transform_0(%arg0: i32) -> (i32, i32) {
    %c0_i32 = arith.constant 0 : i32
    %c0_i32_0 = arith.constant 0 : i32
    return %arg0, %c0_i32 : i32, i32
  }
  func.func @transform_1(%arg0: i32) -> (i32, i32) {
    %c0_i32 = arith.constant 0 : i32
    %c0_i32_0 = arith.constant 0 : i32
    return %arg0, %c0_i32 : i32, i32
  }
  func.func @transform_2(%arg0: i32) -> (i32, i32) {
    %c0_i32 = arith.constant 0 : i32
    %c0_i32_0 = arith.constant 0 : i32
    %c0_i32_1 = arith.constant 0 : i32
    return %c0_i32, %c0_i32_0 : i32, i32
  }
  func.func @transform_3(%arg0: i32) -> (i32, i32) {
    %c0_i32 = arith.constant 0 : i32
    %c0_i32_0 = arith.constant 0 : i32
    %c0_i32_1 = arith.constant 0 : i32
    return %c0_i32, %c0_i32_0 : i32, i32
  }
  func.func @transform_4(%arg0: i32) -> (i32, i32) {
    %c0_i32 = arith.constant 0 : i32
    %c0_i32_0 = arith.constant 0 : i32
    return %arg0, %c0_i32 : i32, i32
  }
}

</mosaic_0001>

<bundles_post_ra>
// kernel: side_effect_predictor_forward.1
= control target key start
LH: loop header
LB: loop body
LE: loop exit
PB: predicated region body
PF: predicated region fallthrough
CT: control target
= control target key end

     0   :  { %vm23_vm0 = vcmask 130048   ;;  %s132_s2 = inlined_call_operand.vmem [shape: f32[32,128], index: 2, kind: input, shape index: {}]   ;;  %s133_s1 = inlined_call_operand.vmem [shape: f32[8,16], index: 1, kind: input, shape index: {}]   ;;  %s134_s0 = inlined_call_operand.vmem [shape: f32[8,16], index: 0, kind: input, shape index: {}]   ;;  %s135_s3 = inlined_call_operand.vmem [shape: f32[1,128], index: 3, kind: input, shape index: {}]   ;;  %s136_s4 = inlined_call_operand.vmem [shape: f32[8,128], index: 4, kind: output, shape index: {}]  }
   0x1   :  { %v22_v0 = vld [vmem:[%s132_s2 + $0x18] sm:$0xff]  ;;  %v19_v1 = vld [vmem:[%s132_s2 + $0x8] sm:$0xff]  ;;  %v21_v2 = vld [vmem:[%s132_s2 + $0x10] sm:$0xff] }
   0x2   :  { %41 = vmatpush.msra.mxu0 %v22_v0  ;;  %64 = vmatpush.msra.mxu1 %v19_v1  ;;  %v18_v3 = vld [vmem:[%s132_s2] sm:$0xff] }
   0x3   :  { %v20_v4 = vld [vmem:[%s133_s1] sm:$0xff] }
   0x4   :  { %v17_v5 = vld [vmem:[%s134_s0] sm:$0xff]  ;;  %42 = vmatpush.msra.mxu0 %v21_v2  ;;  %65 = vmatpush.msra.mxu1 %v18_v3 }
   0x5   :  { %80 = vmatmul.msk.f32.vlgmr.msra.gmra.mxu0 %vm23_vm0, %v20_v4  ;;  %81 = vmatmul.msk.f32.vlgmr.msra.gmra.mxu1 %vm23_vm0, %v17_v5  ;;  %v82_v6 = vld [vmem:[%s135_s3] ss:$0 sm:$0xff] }
  0x82   :  { %v44_v7 = vpop.f32.mrf.mxu0  ;;  %v67_v8 = vpop.f32.mrf.mxu1 }
  0x83   :  { %v68_v9 = vadd.f32 %v67_v8, %v44_v7 }
  0x85   :  { %v74_v10 = vadd.f32 %v82_v6, %v68_v9 }
  0x87   :  { %75 = vst [vmem:[%s136_s4] sm:$0xff] %v74_v10 }

</bundles_post_ra>
